<compile_context>
chip_gen: v7x
topology: tpu7x:2x2x1
jax: 0.10.0
libtpu: 0.0.40
codegen_flags: <defaults>
</compile_context>

<pallas_src>
import functools

import jax
import jax.numpy as jnp
from jax.experimental import pallas as pl
from jax.experimental.pallas import tpu as pltpu


def _channel_attention_kernel(x_ref, w1t_ref, w2t_ref, o_ref, sum_ref, max_ref,
                              *, hw_total, hw_tile, tb):
    # x_ref block:   (TB, C, t_hw)   one packed group of batch elements
    # w1t_ref block: (C, hidden)     fc1 weight, pre-transposed
    # w2t_ref block: (hidden, C)     fc2 weight, pre-transposed
    # o_ref block:   (1, TB, C)      lane-dense output
    # sum_ref/max_ref: (TB, C) f32 scratch accumulators (persist across hw axis)
    hw_idx = pl.program_id(1)
    n_hw = pl.num_programs(1)

    @pl.when(hw_idx == 0)
    def _init():
        sum_ref[...] = jnp.zeros_like(sum_ref)
        max_ref[...] = jnp.full_like(max_ref, -jnp.inf)

    # Upcast per block (supports bf16 HBM streaming); accumulation stays f32.
    x = x_ref[...].astype(jnp.float32)          # (TB, C, t_hw)

    def _update(xs, xm):
        sum_ref[...] += jnp.sum(xs, axis=-1)                              # (TB, C)
        max_ref[...] = jnp.maximum(max_ref[...], jnp.max(xm, axis=-1))    # (TB, C)

    if hw_total % hw_tile != 0:
        # Ragged spatial extent: only the LAST tile pays for the masking.
        is_tail = hw_idx == n_hw - 1

        @pl.when(hw_idx < n_hw - 1)
        def _full_tile():
            _update(x, x)

        @pl.when(is_tail)
        def _tail_tile():
            col = jax.lax.broadcasted_iota(jnp.int32, x.shape, 2)
            valid = (hw_idx * hw_tile + col) < hw_total
            _update(jnp.where(valid, x, 0.0), jnp.where(valid, x, -jnp.inf))
    else:
        _update(x, x)

    @pl.when(hw_idx == n_hw - 1)
    def _finalize():
        avg = sum_ref[...] * (1.0 / hw_total)          # (TB, C) global avg pool
        mx = max_ref[...]                              # (TB, C) global max pool

        # One fused fc1 over both pooled vectors, then fc2 once via linearity:
        #   fc2(relu(fc1(avg))) + fc2(relu(fc1(max)))
        #     == fc2(relu(fc1(avg)) + relu(fc1(max)))
        pooled = jnp.concatenate([avg, mx], axis=0)    # (2*TB, C)
        h = jnp.maximum(
            jnp.dot(pooled, w1t_ref[...], preferred_element_type=jnp.float32),
            0.0)                                       # (2*TB, hidden)
        h = h[:tb] + h[tb:]                            # (TB, hidden)
        logits = jnp.dot(h, w2t_ref[...],
                         preferred_element_type=jnp.float32)  # (TB, C)
        o_ref[0] = jax.nn.sigmoid(logits)


def _budgets():
    """Per-generation (x-tile target bytes, scoped VMEM limit bytes)."""
    kind = ""
    try:
        kind = jax.devices()[0].device_kind.lower()
    except Exception:
        pass
    if "v7" in kind:
        # v7x: 64 MiB physical VMEM -> keep double-buffered tiles well inside.
        return 12 * 1024 * 1024, 48 * 1024 * 1024
    # v5e / v6e (128 MiB physical VMEM) and anything else.
    return 16 * 1024 * 1024, 64 * 1024 * 1024


def _choose_tiling(B, C, HW, itemsize, target_bytes, hw_tile=None, batch_tile=None):
    """Pick (TB, t_hw): batch-pack factor and spatial tile (lanes)."""
    # --- spatial tile -------------------------------------------------------
    if hw_tile is not None:
        t_hw = HW if hw_tile >= HW else max(128, (hw_tile // 128) * 128)
    else:
        elem_bytes = C * HW * itemsize
        if elem_bytes <= target_bytes:
            t_hw = HW
        else:
            t_hw = max(128, (target_bytes // (C * itemsize)) // 128 * 128)
            if t_hw >= HW:
                t_hw = HW
            else:
                # Prefer an exact divisor of HW so the masked tail path never runs.
                t = t_hw
                while t >= 128:
                    if HW % t == 0:
                        t_hw = t
                        break
                    t -= 128

    # --- batch packing ------------------------------------------------------
    elem_bytes = C * HW * itemsize
    if batch_tile is not None:
        tb = max(1, min(B, int(batch_tile)))
    elif t_hw == HW and elem_bytes <= target_bytes:
        tb = max(1, min(B, target_bytes // max(elem_bytes, 1)))
    else:
        tb = 1
    while B % tb != 0:
        tb -= 1
    # Keep >= 2 batch blocks when possible so the "parallel" axis feeds both
    # TensorCores on v7x (cheap: one extra grid step).
    if batch_tile is None and B >= 2 and B // tb < 2:
        tb2 = B // 2
        while tb2 >= 1 and B % tb2 != 0:
            tb2 -= 1
        tb = max(1, tb2)
    return tb, t_hw


def channel_attention(x_nchw, w1, w2, *, hw_tile=None, batch_tile=None):
    """Pallas ChannelAttention forward.

    Args:
      x_nchw: (B, C, H, W) float32 or bfloat16, PyTorch NCHW layout.
      w1:     (C//r, C) float32, fc1 1x1-conv weight (out, in), squeezed.
      w2:     (C, C//r) float32, fc2 1x1-conv weight (out, in), squeezed.
      hw_tile: optional spatial tile override (rounded down to a multiple of 128).
      batch_tile: optional batch-pack override (clamped to a divisor of B).

    Returns:
      (B, C, 1, 1) float32, matching the nn.Module output.
    """
    B, C, H, W = x_nchw.shape
    HW = H * W
    hidden = w1.shape[0]
    assert w1.shape == (hidden, C) and w2.shape == (C, hidden)

    itemsize = jnp.dtype(x_nchw.dtype).itemsize
    tile_target, vmem_limit = _budgets()
    tb, t_hw = _choose_tiling(B, C, HW, itemsize, tile_target,
                              hw_tile=hw_tile, batch_tile=batch_tile)
    n_b = B // tb
    n_hw = pl.cdiv(HW, t_hw)

    # Free reshape only -- no NCHW->NHWC transpose pass over HBM.
    x = x_nchw.reshape(B, C, HW)
    # Tiny weights: pre-transpose host-side so no in-kernel transposes.
    w1t = jnp.asarray(w1, jnp.float32).T      # (C, hidden)
    w2t = jnp.asarray(w2, jnp.float32).T      # (hidden, C)

    kernel = functools.partial(_channel_attention_kernel,
                               hw_total=HW, hw_tile=t_hw, tb=tb)

    out = pl.pallas_call(
        kernel,
        out_shape=jax.ShapeDtypeStruct((n_b, tb, C), jnp.float32),
        grid_spec=pltpu.PrefetchScalarGridSpec(
            num_scalar_prefetch=0,
            grid=(n_b, n_hw),
            in_specs=[
                # NOTE: could sweep pipeline_mode=pl.Buffered(3) on v7x once
                # tiles are large and per-tile compute is near-zero.
                pl.BlockSpec((tb, C, t_hw), lambda b, h: (b, 0, h)),
                pl.BlockSpec((C, hidden), lambda b, h: (0, 0)),
                pl.BlockSpec((hidden, C), lambda b, h: (0, 0)),
            ],
            out_specs=pl.BlockSpec((1, tb, C), lambda b, h: (b, 0, 0)),
            scratch_shapes=[
                pltpu.VMEM((tb, C), jnp.float32),  # running sum
                pltpu.VMEM((tb, C), jnp.float32),  # running max
            ],
        ),
        compiler_params=pltpu.CompilerParams(
            dimension_semantics=("parallel", "arbitrary"),
            vmem_limit_bytes=vmem_limit,
        ),
    )(x, w1t, w2t)

    # (n_b, TB, C) -> (B, C, 1, 1) to match the PyTorch module's output.
    return out.reshape(B, C, 1, 1)


def channel_attention_ref(x_nchw, w1, w2):
    """Pure-JAX reference (mirrors the PyTorch forward)."""
    xf = x_nchw.astype(jnp.float32)
    avg = jnp.mean(xf, axis=(2, 3))                # (B, C)
    mx = jnp.max(xf, axis=(2, 3))                  # (B, C)

    def mlp(v):                                    # v: (B, C)
        h = jnp.maximum(v @ w1.T, 0.0)             # (B, C//r)
        return h @ w2.T                            # (B, C)

    out = jax.nn.sigmoid(mlp(avg) + mlp(mx))
    return out[:, :, None, None]


if __name__ == "__main__":
    key = jax.random.PRNGKey(0)
    ks = jax.random.split(key, 6)

    # --- Test 1: module-default shape, automatic tiling ----------------------
    B, C, H, W = 2, 64, 16, 16
    ratio = 16
    hidden = C // ratio  # 4

    x = jax.random.normal(ks[0], (B, C, H, W), dtype=jnp.float32)
    w1 = jax.random.normal(ks[1], (hidden, C), dtype=jnp.float32) * 0.1  # fc1
    w2 = jax.random.normal(ks[2], (C, hidden), dtype=jnp.float32) * 0.1  # fc2

    out = jax.block_until_ready(channel_attention(x, w1, w2))
    ref = channel_attention_ref(x, w1, w2)
    assert out.shape == (B, C, 1, 1)
    assert jnp.allclose(out, ref, atol=1e-5, rtol=1e-5), "test1 mismatch"

    # --- Test 2: multi-tile HW with ragged last tile + batch packing ---------
    B2, C2, H2, W2 = 2, 8, 17, 17        # HW = 289 = 2*128 + 33 (ragged tail)
    hidden2 = 2
    x2 = jax.random.normal(ks[3], (B2, C2, H2, W2), dtype=jnp.float32)
    w1b = jax.random.normal(ks[4], (hidden2, C2), dtype=jnp.float32) * 0.1
    w2b = jax.random.normal(ks[5], (C2, hidden2), dtype=jnp.float32) * 0.1

    out2 = jax.block_until_ready(
        channel_attention(x2, w1b, w2b, hw_tile=128, batch_tile=2))
    ref2 = channel_attention_ref(x2, w1b, w2b)
    assert out2.shape == (B2, C2, 1, 1)
    assert jnp.allclose(out2, ref2, atol=1e-5, rtol=1e-5), "test2 mismatch"

    # --- Test 3: bf16 activations streamed as bf16, batch-packed TB=2 --------
    x3 = x.astype(jnp.bfloat16)
    out3 = jax.block_until_ready(channel_attention(x3, w1, w2, batch_tile=2))
    ref3 = channel_attention_ref(x3, w1, w2)   # ref upcasts the same bf16 values
    assert out3.shape == (B, C, 1, 1)
    assert jnp.allclose(out3, ref3, atol=1e-4, rtol=1e-4), "test3 mismatch"

    print("KERNEL_OK")
</pallas_src>

<mosaic_0001>
module attributes {stable_mosaic.version = 11 : i64} {
  func.func @_channel_attention_kernel(%arg0: i32, %arg1: i32, %arg2: memref<1x64x256xf32, #tpu.memory_space<vmem>>, %arg3: memref<64x4xf32, #tpu.memory_space<vmem>>, %arg4: memref<4x64xf32, #tpu.memory_space<vmem>>, %arg5: memref<1x1x64xf32, #tpu.memory_space<vmem>>, %arg6: memref<1x64xf32, #tpu.memory_space<vmem>>, %arg7: memref<1x64xf32, #tpu.memory_space<vmem>>) attributes {dimension_semantics = [#tpu.dimension_semantics<parallel>, #tpu.dimension_semantics<arbitrary>], iteration_bounds = array<i64: 2, 1>, scalar_prefetch = 0 : i64, scratch_operands = 2 : i64, tpu.core_type = #tpu.core_type<tc>, window_params = [{transform_indices = @transform_0, window_bounds = array<i64: 1, 64, 256>}, {pipeline_mode = #tpu.pipeline_mode<synchronous>, transform_indices = @transform_1, window_bounds = array<i64: 64, 4>}, {pipeline_mode = #tpu.pipeline_mode<synchronous>, transform_indices = @transform_2, window_bounds = array<i64: 4, 64>}, {transform_indices = @transform_3, window_bounds = array<i64: 1, 1, 64>}]} {
    %c0_i32 = arith.constant 0 : i32
    %0 = arith.cmpi eq, %arg1, %c0_i32 : i32
    %1 = arith.extui %0 : i1 to i32
    %c0_i32_0 = arith.constant 0 : i32
    %2 = arith.cmpi ne, %1, %c0_i32_0 : i32
    scf.if %2 {
      %cst_14 = arith.constant 0.000000e+00 : f32
      %15 = vector.broadcast %cst_14 : f32 to vector<1x64xf32>
      %c0_15 = arith.constant 0 : index
      %c0_16 = arith.constant 0 : index
      %16 = vector.load %arg6[%c0_15, %c0_16] : memref<1x64xf32, #tpu.memory_space<vmem>>, vector<1x64xf32>
      tpu.vector_store %arg6[%c0_15, %c0_16], %15 {strides = array<i32>} : memref<1x64xf32, #tpu.memory_space<vmem>>, vector<1x64xf32>,
      %cst_17 = arith.constant 0xFF800000 : f32
      %17 = vector.broadcast %cst_17 : f32 to vector<1x64xf32>
      %c0_18 = arith.constant 0 : index
      %c0_19 = arith.constant 0 : index
      %18 = vector.load %arg7[%c0_18, %c0_19] : memref<1x64xf32, #tpu.memory_space<vmem>>, vector<1x64xf32>
      tpu.vector_store %arg7[%c0_18, %c0_19], %17 {strides = array<i32>} : memref<1x64xf32, #tpu.memory_space<vmem>>, vector<1x64xf32>,
    } else {
    }
    %c0 = arith.constant 0 : index
    %c0_1 = arith.constant 0 : index
    %c0_2 = arith.constant 0 : index
    %3 = vector.load %arg2[%c0, %c0_1, %c0_2] : memref<1x64x256xf32, #tpu.memory_space<vmem>>, vector<1x64x256xf32>
    %c0_3 = arith.constant 0 : index
    %c0_4 = arith.constant 0 : index
    %4 = vector.load %arg6[%c0_3, %c0_4] : memref<1x64xf32, #tpu.memory_space<vmem>>, vector<1x64xf32>
    %cst = arith.constant dense<0.000000e+00> : vector<1x64xf32>
    %5 = vector.multi_reduction <add>, %3, %cst [2] : vector<1x64x256xf32> to vector<1x64xf32>
    %6 = arith.addf %4, %5 : vector<1x64xf32>
    %c0_5 = arith.constant 0 : index
    %c0_6 = arith.constant 0 : index
    %7 = vector.load %arg6[%c0_5, %c0_6] : memref<1x64xf32, #tpu.memory_space<vmem>>, vector<1x64xf32>
    tpu.vector_store %arg6[%c0_5, %c0_6], %6 {strides = array<i32>} : memref<1x64xf32, #tpu.memory_space<vmem>>, vector<1x64xf32>,
    %c0_7 = arith.constant 0 : index
    %c0_8 = arith.constant 0 : index
    %8 = vector.load %arg7[%c0_7, %c0_8] : memref<1x64xf32, #tpu.memory_space<vmem>>, vector<1x64xf32>
    %cst_9 = arith.constant dense<0xFF800000> : vector<1x64xf32>
    %9 = vector.multi_reduction <maximumf>, %3, %cst_9 [2] : vector<1x64x256xf32> to vector<1x64xf32>
    %10 = arith.maximumf %8, %9 : vector<1x64xf32>
    %c0_10 = arith.constant 0 : index
    %c0_11 = arith.constant 0 : index
    %11 = vector.load %arg7[%c0_10, %c0_11] : memref<1x64xf32, #tpu.memory_space<vmem>>, vector<1x64xf32>
    tpu.vector_store %arg7[%c0_10, %c0_11], %10 {strides = array<i32>} : memref<1x64xf32, #tpu.memory_space<vmem>>, vector<1x64xf32>,
    %c0_i32_12 = arith.constant 0 : i32
    %12 = arith.cmpi eq, %arg1, %c0_i32_12 : i32
    %13 = arith.extui %12 : i1 to i32
    %c0_i32_13 = arith.constant 0 : i32
    %14 = arith.cmpi ne, %13, %c0_i32_13 : i32
    scf.if %14 {
      %c0_14 = arith.constant 0 : index
      %c0_15 = arith.constant 0 : index
      %15 = vector.load %arg6[%c0_14, %c0_15] : memref<1x64xf32, #tpu.memory_space<vmem>>, vector<1x64xf32>
      %cst_16 = arith.constant 3.906250e-03 : f32
      %16 = vector.broadcast %cst_16 : f32 to vector<1x64xf32>
      %17 = arith.mulf %15, %16 : vector<1x64xf32>
      %c0_17 = arith.constant 0 : index
      %c0_18 = arith.constant 0 : index
      %18 = vector.load %arg7[%c0_17, %c0_18] : memref<1x64xf32, #tpu.memory_space<vmem>>, vector<1x64xf32>
      %19 = tpu.concatenate %17, %18 in 0 : vector<1x64xf32>, vector<1x64xf32> -> vector<2x64xf32>
      %c0_19 = arith.constant 0 : index
      %c0_20 = arith.constant 0 : index
      %20 = vector.load %arg3[%c0_19, %c0_20] : memref<64x4xf32, #tpu.memory_space<vmem>>, vector<64x4xf32>
      %cst_21 = arith.constant dense<0.000000e+00> : vector<2x4xf32>
      %21 = tpu.matmul %19, %20, %cst_21 {dimension_numbers = #tpu.dot_dimension_numbers<[1], [0], [0], [1], [0, 0, 1, 1], [], []>} : vector<2x64xf32>, vector<64x4xf32>, vector<2x4xf32> -> vector<2x4xf32>
      %cst_22 = arith.constant 0.000000e+00 : f32
      %22 = vector.broadcast %cst_22 : f32 to vector<2x4xf32>
      %23 = arith.maximumf %21, %22 : vector<2x4xf32>
      %24 = vector.extract_strided_slice %23 {offsets = [0, 0], sizes = [1, 4], strides = [1, 1]} : vector<2x4xf32> to vector<1x4xf32>
      %25 = vector.extract_strided_slice %23 {offsets = [1, 0], sizes = [1, 4], strides = [1, 1]} : vector<2x4xf32> to vector<1x4xf32>
      %26 = arith.addf %24, %25 : vector<1x4xf32>
      %c0_23 = arith.constant 0 : index
      %c0_24 = arith.constant 0 : index
      %27 = vector.load %arg4[%c0_23, %c0_24] : memref<4x64xf32, #tpu.memory_space<vmem>>, vector<4x64xf32>
      %cst_25 = arith.constant dense<0.000000e+00> : vector<1x64xf32>
      %28 = tpu.matmul %26, %27, %cst_25 {dimension_numbers = #tpu.dot_dimension_numbers<[1], [0], [0], [1], [0, 0, 1, 1], [], []>} : vector<1x4xf32>, vector<4x64xf32>, vector<1x64xf32> -> vector<1x64xf32>
      %29 = arith.negf %28 : vector<1x64xf32>
      %30 = math.exp %29 : vector<1x64xf32>
      %cst_26 = arith.constant 1.000000e+00 : f32
      %31 = vector.broadcast %cst_26 : f32 to vector<1x64xf32>
      %32 = arith.addf %31, %30 : vector<1x64xf32>
      %33 = arith.divf %31, %32 : vector<1x64xf32>
      %c0_27 = arith.constant 0 : index
      %c0_28 = arith.constant 0 : index
      %c0_29 = arith.constant 0 : index
      %34 = vector.load %arg5[%c0_27, %c0_28, %c0_29] : memref<1x1x64xf32, #tpu.memory_space<vmem>>, vector<1x1x64xf32>
      %35 = vector.shape_cast %34 : vector<1x1x64xf32> to vector<1x64xf32>
      %36 = vector.shape_cast %33 : vector<1x64xf32> to vector<1x1x64xf32>
      tpu.vector_store %arg5[%c0_27, %c0_28, %c0_29], %36 {strides = array<i32>} : memref<1x1x64xf32, #tpu.memory_space<vmem>>, vector<1x1x64xf32>,
    } else {
    }
    return
  }
  func.func @transform_0(%arg0: i32, %arg1: i32) -> (i32, i32, i32) {
    %c0_i32 = arith.constant 0 : i32
    %c0_i32_0 = arith.constant 0 : i32
    return %arg0, %c0_i32, %arg1 : i32, i32, i32
  }
  func.func @transform_1(%arg0: i32, %arg1: i32) -> (i32, i32) {
    %c0_i32 = arith.constant 0 : i32
    %c0_i32_0 = arith.constant 0 : i32
    %c0_i32_1 = arith.constant 0 : i32
    return %c0_i32, %c0_i32_0 : i32, i32
  }
  func.func @transform_2(%arg0: i32, %arg1: i32) -> (i32, i32) {
    %c0_i32 = arith.constant 0 : i32
    %c0_i32_0 = arith.constant 0 : i32
    %c0_i32_1 = arith.constant 0 : i32
    return %c0_i32, %c0_i32_0 : i32, i32
  }
  func.func @transform_3(%arg0: i32, %arg1: i32) -> (i32, i32, i32) {
    %c0_i32 = arith.constant 0 : i32
    %c0_i32_0 = arith.constant 0 : i32
    %c0_i32_1 = arith.constant 0 : i32
    return %arg0, %c0_i32, %c0_i32_0 : i32, i32, i32
  }
}

</mosaic_0001>

<bundles_post_ra>
// kernel: tpu_custom_call.1
= control target key start
LH: loop header
LB: loop body
LE: loop exit
PB: predicated region body
PF: predicated region fallthrough
CT: control target
= control target key end

     0   :  { %8 = vsyncpa [#allocation5], 0  ;;  %s3054_s0 = inlined_call_operand.hbm [shape: f32[2,64,256], index: 0, kind: input, shape index: {}]   ;;  %s3055_s1 = inlined_call_operand.hbm [shape: f32[64,4], index: 1, kind: input, shape index: {}]   ;;  %s3056_s2 = inlined_call_operand.hbm [shape: f32[4,64], index: 2, kind: input, shape index: {}]   ;;  %s3057_s3 = inlined_call_operand.hbm [shape: f32[2,1,64], index: 3, kind: output, shape index: {}]  }
   0x1   :  { %10 = vsyncpa [#allocation5 + $0x1], 0 }
   0x2   :  { %11 = vsyncpa [#allocation8], 0 }
   0x3   :  { %12 = vsyncpa [#allocation6], 0 }
   0x4   :  { %14 = vsyncpa [#allocation6 + $0x1], 0  ;;  %s2466_s12 = smov 0   ;;  %s2468_s13 = smov 0  }
   0x5   :  { %s2470_s14 = smov 0   ;;  %s2472_s15 = smov 0  }
   0x6   :  { %s2474_s16 = smov 0   ;;  %s2476_s17 = smov 0  }
   0x7 LB: > { %s2090_s18 = sadd.s32 4294967295, %s2430_s17   ;;  %s2091_s19 = sadd.s32 4294967294, %s2430_s17   ;;  %s2430_s17 = sphi %s2476_s17, %s20_s17   ;;  %s2426_s16 = sphi %s2474_s16, %s3079_s16   ;;  %s2422_s15 = sphi %s2472_s15, %s3078_s15   ;;  %s2418_s14 = sphi %s2470_s14, %s3077_s14   ;;  %s2414_s13 = sphi %s2468_s13, %s3076_s13   ;;  %s2410_s12 = sphi %s2466_s12, %s3075_s12  }
   0x8   : > { %p54_p0 = scmp.ne.s32.totalorder %s2414_s13, %s2410_s12  ;;  %p2500_p1 = scmp.eq.s32.totalorder %s2090_s18, 0 }
   0x9   : > { %p2504_p2 = scmp.eq.s32.totalorder %s2090_s18, 1  ;;  %p126_p3 = scmp.eq.s32.totalorder %s2091_s19, 1 }
   0xa   : > { %s3062_s20 = scalar_select %p2500_p1, 1, 0 }
   0xb   : > { %p2510_p4 = por %p2500_p1, %p54_p0  ;;  %p2092_p5 = scmp.ge.s32.totalorder %s2430_s17, 1 }
   0xc   : > { %p2515_p6 = por %p126_p3, %p54_p0  ;;  %p133_p7 = scmp.lt.s32.totalorder %s2430_s17, 3 }
   0xd   : > { %s3064_s22 = scalar_select %p2510_p4, 1, 0 }
   0xe   : > { %s3065_s23 = scalar_select %p2515_p6, 1, 0 }
   0xf   : > { %p2520_p8 = pnand %p2092_p5, %p133_p7  ;;  %s2432_s25 = smov [#allocation7]  }
  0x10   : > { %s145_s26 = sshll.u32 %s2432_s25, 4  ;;  %s2433_s28 = smov [#allocation9]   ;;  %s2524_s26 = int_to_ptr.vmem [resolvable:$true] %s145_s26 }
  0x11   : > { %p2171_p9 = pneg %p2520_p8  ;;  %s159_s29 = sshll.u32 %s2433_s28, 4  ;;  %s2535_s29 = int_to_ptr.vmem [resolvable:$true] %s159_s29 }
  0x12   : > { %s2258_s5 = scalar_lea.hbm %s3055_s1, 1024 }
  0x13   : > { %p2531_p11 = pnand %p2171_p9, %p2500_p1  ;;  %p2259_p12 = scmp.ne.s32.totalorder %s3055_s1, %s2258_s5 }
  0x14   : > { %p2265_p5 = scmp.lt.u32.totalorder %s2258_s5, %s3055_s1 }
  0x15   : > { %p2260_p13 = pneg %p2531_p11 }
  0x17   : > { %p2261_p0 = pnand %p2260_p13, %p2259_p12 }
  0x19   : > { %p2262_p3 = pneg %p2261_p0 }
  0x1b   : > { %p2267_p7 = pnand %p2265_p5, %p2262_p3 }
  0x1d   : > { %2270 = shalt.err (!%p2267_p7)
}
  0x1e   : > { %s2271_s10 = scalar_lea.vmem %s2524_s26, 1024  ;;  %p2279_p1 = scmp.lt.s32.totalorder %s2524_s26, %s2524_s26 }
  0x1f   : > { %p2272_p9 = scmp.ne.s32.totalorder %s2524_s26, %s2271_s10  ;;  %p2280_p12 = scmp.lt.s32.totalorder %s2271_s10, %s2271_s10 }
  0x21   : > { %p2274_p10 = pnand %p2272_p9, %p2260_p13  ;;  %p2281_p0 = por %p2280_p12, %p2279_p1 }
  0x23   : > { %p2275_p6 = pneg %p2274_p10 }
  0x25   : > { %p2282_p4 = pnand %p2281_p0, %p2275_p6 }
  0x27   : > { %2285 = shalt.err (!%p2282_p4)
}
  0x28   : > { %s2434_s11 = smov 128   ;;  %s2435_s18 = smov 8  }
  0x29   : > { %2174 = dma.hbm_to_vmem [thread:$0]  (!%p2531_p11), %s3055_s1, 1024, %s2524_s26, [#allocation8], %s2434_s11, %s2434_s11, %s2435_s18  }
  0x2a   : > { %s2286_s4 = scalar_lea.hbm %s3056_s2, 64 }
  0x2b   : > { %p2287_p1 = scmp.ne.s32.totalorder %s3056_s2, %s2286_s4  ;;  %p2293_p10 = scmp.lt.u32.totalorder %s2286_s4, %s3056_s2 }
  0x2d   : > { %p2289_p4 = pnand %p2287_p1, %p2260_p13 }
  0x2f   : > { %p2290_p6 = pneg %p2289_p4 }
  0x31   : > { %p2295_p3 = pnand %p2293_p10, %p2290_p6 }
  0x33   : > { %2298 = shalt.err (!%p2295_p3)
}
  0x34   : > { %s2299_s26 = scalar_lea.vmem %s2535_s29, 64  ;;  %p2307_p12 = scmp.lt.s32.totalorder %s2535_s29, %s2535_s29 }
  0x35   : > { %p2300_p5 = scmp.ne.s32.totalorder %s2535_s29, %s2299_s26  ;;  %p2308_p0 = scmp.lt.s32.totalorder %s2299_s26, %s2299_s26 }
  0x37   : > { %p2302_p7 = pnand %p2300_p5, %p2260_p13  ;;  %p2309_p1 = por %p2308_p0, %p2307_p12 }
  0x39   : > { %p2303_p9 = pneg %p2302_p7 }
  0x3b   : > { %p2310_p4 = pnand %p2309_p1, %p2303_p9 }
  0x3d   : > { %2313 = shalt.err (!%p2310_p4)
}
  0x3e   : > { %2177 = dma.hbm_to_vmem [thread:$0]  (!%p2531_p11), %s3056_s2, 64, %s2535_s29, [#allocation8]  }
  0x3f   : > { %s32_s11 = sadd.s32 1, %s2426_s16  ;;  %s41_s18 = sadd.s32 1, %s2418_s14 }
  0x40   : > { %p34_p13 = scmp.ge.s32.totalorder %s32_s11, 2  ;;  %p48_p6 = scmp.ne.s32.totalorder %s2418_s14, %s2414_s13 }
  0x41   : > { %p49_p10 = scmp.eq.s32.totalorder %s2430_s17, 0  ;;  %p2188_p3 = scmp.lt.s32.totalorder %s2430_s17, 2 }
  0x42   : > { %s3081_s11 = smov (%p34_p13, %s32_s11), 0  ;;  %p2599_p7 = por %p2504_p2, %p48_p6 }
  0x43   : > { %p50_p5 = por %p49_p10, %p48_p6  ;;  %s36_s19 = ssub.s32 %s2426_s16, %s3081_s11 }
  0x44   : > { %s3068_s27 = scalar_select %p2599_p7, 1, 0 }
  0x45   : > { %s170_s25 = sand.u32 1, %s2418_s14   ;;  %p39_p9 = scmp.eq.s32.totalorder %s36_s19, 0 }
  0x46   : > { %s2096_s29 = sshll.u32 %s170_s25, 7  ;;  %s2111_s28 = sshll.u32 %s2426_s16, 11 }
  0x47   : > { %s2608_s30 = scalar_select %p39_p9, %s2418_s14, %s41_s18  }
  0x48   : > { %s2613_s6 = scalar_lea.hbm %s3054_s0, %s2111_s28  ;;  %s174_s21 = scalar_lea.vmem [#allocation4], %s2096_s29 }
  0x49   : > { %s183_s7 = sshll.u32 %s174_s21, 4  ;;  %p2617_p2 = pnand %p2188_p3, %p50_p5  ;;  %s2621_s7 = int_to_ptr.vmem [resolvable:$true] %s183_s7 }
  0x4a   : > { %s2623_s26 = scalar_lea.sflag [#allocation5], %s170_s25  ;;  %s2314_s9 = scalar_lea.hbm %s2613_s6, 2048 }
  0x4b   : > { %p2315_p11 = scmp.ne.s32.totalorder %s2613_s6, %s2314_s9  ;;  %p2316_p12 = pneg %p2617_p2 }
  0x4c   : > { %s2319_s19 = scalar_lea.hbm %s3054_s0, 4096  ;;  %p2320_p4 = scmp.lt.u32.totalorder %s2613_s6, %s3054_s0 }
  0x4d   : > { %p2317_p0 = pnand %p2316_p12, %p2315_p11  ;;  %p2321_p13 = scmp.lt.u32.totalorder %s2319_s19, %s2314_s9 }
  0x4e   : > { %p2323_p10 = scmp.lt.u32.totalorder %s2314_s9, %s2613_s6 }
  0x4f   : > { %p2318_p1 = pneg %p2317_p0  ;;  %p2322_p6 = por %p2321_p13, %p2320_p4 }
  0x51   : > { %p2324_p3 = por %p2323_p10, %p2322_p6 }
  0x53   : > { %p2325_p5 = pnand %p2324_p3, %p2318_p1 }
  0x55   : > { %2328 = shalt.err (!%p2325_p5)
}
  0x56   : > { %s2329_s25 = scalar_lea.vmem %s2621_s7, 2048  ;;  %s2436_s4 = smov [#allocation4]  }
  0x57   : > { %p2330_p9 = scmp.ne.s32.totalorder %s2621_s7, %s2329_s25  ;;  %s2334_s5 = sshll.u32 %s2436_s4, 4  ;;  %s2335_s5 = int_to_ptr.vmem [resolvable:$false] %s2334_s5 }
  0x58   : > { %s2336_s21 = scalar_lea.vmem %s2335_s5, 4096  ;;  %p2337_p7 = scmp.lt.s32.totalorder %s2621_s7, %s2335_s5 }
  0x59   : > { %p2332_p11 = pnand %p2330_p9, %p2316_p12  ;;  %p2338_p4 = scmp.lt.s32.totalorder %s2336_s21, %s2329_s25 }
  0x5b   : > { %p2333_p0 = pneg %p2332_p11  ;;  %p2339_p13 = por %p2338_p4, %p2337_p7 }
  0x5d   : > { %p2340_p6 = pnand %p2339_p13, %p2333_p0 }
  0x5f   : > { %2343 = shalt.err (!%p2340_p6)
}
  0x60   : > { %s2437_s9 = smov 256   ;;  %s2438_s10 = smov 16  }
  0x61   : > { %2181 = dma.hbm_to_vmem [thread:$0]  (!%p2617_p2), %s2613_s6, 2048, %s2621_s7, %s2623_s26, %s2437_s9, %s2437_s9, %s2438_s10  }
  0x62   : > { %195 = sbr.rel (%p2520_p8) target bundleno = 962 (0x3c2), region = 32  ;;  %s2654_s18 = sand.u32 (!%p2520_p8), 1, %s2414_s13  }
  0x63   : > { %s2100_s19 = sshll.u32 (!%p2520_p8), %s2654_s18, 7  ;;  %s198_s29 = scalar_lea.sflag (!%p2520_p8), [#allocation5], %s2654_s18 }
  0x64   : > { %s2658_s28 = scalar_lea.vmem (!%p2520_p8), [#allocation4], %s2100_s19  ;;  %p3070_p7 = scmp.ne.s32.totalorder (!%p2520_p8), %s3064_s22, 0 }
  0x69   : > { %2397 = dma.done.wait (%p3070_p7), %s198_s29, 2048  }
  0x6a   : > { %2399 = vsyncadd (%p3070_p7), %s198_s29, 4294965248  ;;  %p3071_p2 = scmp.ne.s32.totalorder %s3062_s20, 0 }
  0x6c   : > { %2401 = dma.done.wait (%p3071_p2), [#allocation8], 1088  }
  0x6d   : > { %2403 = vsyncadd (%p3071_p2), [#allocation8], 4294966208  ;;  %v239_v0 = vld [vmem:[%s2658_s28] sm:$0xff]  ;;  %v240_v1 = vld [vmem:[%s2658_s28 + $0x8] sm:$0xff]  ;;  %v2439_v30 = vmov 0   ;;  %v288_v33 = vlaneseq  ;;  %vm236_vm0 = vcmask 516096  }
  0x6e   : > { %v243_v2 = vld [vmem:[%s2658_s28 + $0x20] sm:$0xff]  ;;  %v256_v3 = vadd.f32 %v240_v1, %v239_v0  ;;  %v244_v4 = vld [vmem:[%s2658_s28 + $0x28] sm:$0xff]  ;;  %v241_v5 = vld [vmem:[%s2658_s28 + $0x10] sm:$0xff]  ;;  %v1034_v12 = vmax.f32 %v239_v0, %v240_v1  ;;  %2252 = vset.pattern.permute.xlu0 %v2439_v30  ;;  %2253 = vset.pattern.permute.xlu1 %v2439_v30  ;;  %v2440_v34 = vmov 1966171168   ;;  %vm2444_vm1 = vmmov 0  }
  0x6f   : > { %v242_v6 = vld [vmem:[%s2658_s28 + $0x18] sm:$0xff]  ;;  %v262_v7 = vadd.f32 %v244_v4, %v243_v2  ;;  %v245_v8 = vld [vmem:[%s2658_s28 + $0x30] sm:$0xff]  ;;  %v247_v14 = vld [vmem:[%s2658_s28 + $0x40] sm:$0xff]  ;;  %v1040_v17 = vmax.f32 %v243_v2, %v244_v4  ;;  %v549_v35 = vunpack.c.l.s4 %v2440_v34  ;;  %v2685_v36 = vshrl.u32 %v288_v33, 7  ;;  %s2108_s20 = sshll.u32 %s2422_s15, 4  ;;  %s230_s22 = scalar_lea.vmem [#allocation10], %s2654_s18 }
  0x70   : > { %v246_v9 = vld [vmem:[%s2658_s28 + $0x38] sm:$0xff]  ;;  %257 = vadd.xlane.f32.xlu0 %v256_v3  ;;  %v259_v10 = vadd.f32 %v242_v6, %v241_v5  ;;  %v1037_v13 = vmax.f32 %v241_v5, %v242_v6  ;;  %v248_v15 = vld [vmem:[%s2658_s28 + $0x48] sm:$0xff]  ;;  %v249_v18 = vld [vmem:[%s2658_s28 + $0x50] sm:$0xff]  ;;  %vm971_vm2 = vcmask 130112   ;;  %vm978_vm3 = vcmask 195712   ;;  %s1994_s24 = sshll.u32 %s230_s22, 4  ;;  %s3004_s8 = scalar_lea.hbm %s3057_s3, %s2108_s20  ;;  %s3006_s24 = int_to_ptr.vmem [resolvable:$true] %s1994_s24 }
  0x71   : > { %263 = vadd.xlane.f32.xlu1 %v262_v7  ;;  %v265_v11 = vadd.f32 %v246_v9, %v245_v8  ;;  %v268_v16 = vadd.f32 %v248_v15, %v247_v14  ;;  %v250_v19 = vld [vmem:[%s2658_s28 + $0x58] sm:$0xff]  ;;  %v1043_v21 = vmax.f32 %v245_v8, %v246_v9  ;;  %v251_v22 = vld [vmem:[%s2658_s28 + $0x60] sm:$0xff]  ;;  %v252_v23 = vld [vmem:[%s2658_s28 + $0x68] sm:$0xff]  ;;  %v1046_v25 = vmax.f32 %v247_v14, %v248_v15  ;;  %s1982_s26 = scalar_lea.sflag [#allocation6], %s2654_s18  ;;  %s2344_s25 = scalar_lea.vmem %s3006_s24, 16 }
  0x72   : > { %v271_v20 = vadd.f32 %v250_v19, %v249_v18  ;;  %v274_v24 = vadd.f32 %v252_v23, %v251_v22  ;;  %v253_v26 = vld [vmem:[%s2658_s28 + $0x70] sm:$0xff]  ;;  %v254_v27 = vld [vmem:[%s2658_s28 + $0x78] sm:$0xff]  ;;  %v1049_v29 = vmax.f32 %v249_v18, %v250_v19  ;;  %v1052_v31 = vmax.f32 %v251_v22, %v252_v23  ;;  %p2345_p8 = scmp.ne.s32.totalorder %s3006_s24, %s2344_s25  ;;  %p3072_p12 = scmp.ne.s32.totalorder %s3068_s27, 0 }
  0x73   : > { %v277_v28 = vadd.f32 %v254_v27, %v253_v26  ;;  %v1055_v32 = vmax.f32 %v253_v26, %v254_v27  ;;  %v550_v37 = vunpack.c.0.s8 %v549_v35  ;;  %v2688_v38 = vsub.s32 0, %v2685_v36  ;;  %s2445_s15 = smov [#allocation10]  }
  0x74   : > { %260 = vadd.xlane.f32.xlu0 %v259_v10  ;;  %v2691_v39 = vsub.s32 1, %v2685_v36  ;;  %v2694_v40 = vsub.s32 2, %v2685_v36  ;;  %v2697_v41 = vsub.s32 3, %v2685_v36  ;;  %v2700_v42 = vsub.s32 4, %v2685_v36  ;;  %p2346_p1 = pnand %p2345_p8, %p3072_p12  ;;  %s2348_s4 = sshll.u32 %s2445_s15, 4  ;;  %s2349_s4 = int_to_ptr.vmem [resolvable:$false] %s2348_s4 }
  0x75   : > { %266 = vadd.xlane.f32.xlu1 %v265_v11  ;;  %v2703_v43 = vsub.s32 5, %v2685_v36  ;;  %v2706_v44 = vsub.s32 6, %v2685_v36  ;;  %v2709_v45 = vsub.s32 7, %v2685_v36  ;;  %v2712_v47 = vsub.s32 %v550_v37, %v2685_v36  ;;  %s2350_s5 = scalar_lea.vmem %s2349_s4, 32  ;;  %p2351_p3 = scmp.lt.s32.totalorder %s3006_s24, %s2349_s4 }
  0x76   : > { %vm985_vm4 = vcmask 261312   ;;  %vm992_vm5 = vcmask 326912   ;;  %vm999_vm6 = vcmask 392512   ;;  %vm1006_vm7 = vcmask 458112   ;;  %p2347_p10 = pneg %p2346_p1  ;;  %p2352_p5 = scmp.lt.s32.totalorder %s2350_s5, %s2344_s25 }
  0x77   : > { %vm1013_vm8 = vcmask 523712   ;;  %vm1806_vm9 = vcmask 1040384   ;;  %vm1816_vm10 = vcmask 523264   ;;  %vm1900_vm11 = vcmask 1043456  }
  0x78   : > { %1035 = vmax.xlane.f32.xlu0 %v1034_v12  ;;  %vm1896_vm12 = vcmask 31744   ;;  %p2353_p9 = por %p2352_p5, %p2351_p3 }
  0x79   : > { %1038 = vmax.xlane.f32.xlu1 %v1037_v13 }
  0x7a   : > { %p2354_p11 = pnand %p2353_p9, %p2347_p10 }
  0x7c   : > { %269 = vadd.xlane.f32.xlu0 %v268_v16 }
  0x7d   : > { %1041 = vmax.xlane.f32.xlu1 %v1040_v17 }
  0x80   : > { %272 = vadd.xlane.f32.xlu0 %v271_v20 }
  0x81   : > { %1044 = vmax.xlane.f32.xlu1 %v1043_v21 }
  0x84   : > { %275 = vadd.xlane.f32.xlu0 %v274_v24 }
  0x85   : > { %1047 = vmax.xlane.f32.xlu1 %v1046_v25 }
  0x88   : > { %278 = vadd.xlane.f32.xlu0 %v277_v28 }
  0x89   : > { %1050 = vmax.xlane.f32.xlu1 %v1049_v29 }
  0x8c   : > { %1053 = vmax.xlane.f32.xlu0 %v1052_v31 }
  0x8d   : > { %1056 = vmax.xlane.f32.xlu1 %v1055_v32 }
  0xfd   : > { %v258_v46 = vpop.xlane.xlu0 %257 }
  0xfe   : > { %v264_v48 = vpop.xlane.xlu1 %263  ;;  %v291_v49 = vrot.slane %v258_v46, %v2688_v38  ;;  %v295_v50 = vrot.slane %v258_v46, %v2691_v39  ;;  %v299_v51 = vrot.slane %v258_v46, %v2694_v40  ;;  %v303_v52 = vrot.slane %v258_v46, %v2697_v41 }
  0xff   : > { %v307_v53 = vrot.slane %v258_v46, %v2700_v42  ;;  %v311_v54 = vrot.slane %v258_v46, %v2703_v43  ;;  %v315_v55 = vrot.slane %v258_v46, %v2706_v44  ;;  %v319_v56 = vrot.slane %v258_v46, %v2709_v45 }
 0x100   : > { %v544_v57 = vcombine.low %v291_v49, %v295_v50  ;;  %v545_v58 = vcombine.low %v299_v51, %v303_v52  ;;  %v355_v59 = vrot.slane %v264_v48, %v2688_v38  ;;  %v359_v60 = vrot.slane %v264_v48, %v2691_v39 }
 0x101   : > { %v261_v61 = vpop.xlane.xlu0 %260  ;;  %v546_v62 = vcombine.low %v307_v53, %v311_v54  ;;  %v547_v63 = vcombine.low %v315_v55, %v319_v56  ;;  %v363_v0 = vrot.slane %v264_v48, %v2694_v40  ;;  %v367_v1 = vrot.slane %v264_v48, %v2697_v41 }
 0x102   : > { %v2726_v2 = vpop.xlane.xlu1 %266  ;;  %v554_v3 = vrot.slane %v544_v57, %v2712_v47  ;;  %v561_v4 = vrot.slane %v545_v58, %v2712_v47  ;;  %v323_v5 = vrot.slane %v261_v61, %v2688_v38  ;;  %v327_v6 = vrot.slane %v261_v61, %v2691_v39 }
 0x103   : > { %v568_v7 = vrot.slane %v546_v62, %v2712_v47  ;;  %v575_v8 = vrot.slane %v547_v63, %v2712_v47  ;;  %v331_v9 = vrot.slane %v261_v61, %v2694_v40  ;;  %v335_v10 = vrot.slane %v261_v61, %v2697_v41 }
 0x104   : > { %v576_v11 = vcombine.low %v554_v3, %v561_v4  ;;  %v339_v12 = vrot.slane %v261_v61, %v2700_v42  ;;  %v343_v13 = vrot.slane %v261_v61, %v2703_v43  ;;  %v347_v14 = vrot.slane %v261_v61, %v2706_v44 }
 0x105   : > { %v577_v15 = vcombine.low %v568_v7, %v575_v8  ;;  %v351_v16 = vrot.slane %v261_v61, %v2709_v45  ;;  %v593_v17 = vcombine.low %v323_v5, %v327_v6  ;;  %v594_v18 = vcombine.low %v331_v9, %v335_v10 }
 0x106   : > { %v2740_v19 = vpop.xlane.xlu1 %1038  ;;  %v584_v20 = vrot.slane %v576_v11, %v2712_v47  ;;  %v595_v21 = vcombine.low %v339_v12, %v343_v13  ;;  %v371_v22 = vrot.slane %v264_v48, %v2700_v42  ;;  %v375_v23 = vrot.slane %v264_v48, %v2703_v43 }
 0x107   : > { %v591_v24 = vrot.slane %v577_v15, %v2712_v47  ;;  %v596_v25 = vcombine.low %v347_v14, %v351_v16  ;;  %v603_v26 = vrot.slane %v593_v17, %v2712_v47  ;;  %v610_v27 = vrot.slane %v594_v18, %v2712_v47 }
 0x108   : > { %v617_v28 = vrot.slane %v595_v21, %v2712_v47  ;;  %v379_v29 = vrot.slane %v264_v48, %v2706_v44  ;;  %v383_v30 = vrot.slane %v264_v48, %v2709_v45  ;;  %v642_v31 = vcombine.low %v355_v59, %v359_v60  ;;  %v1036_v60 = vpop.xlane.xlu0 %1035 }
 0x109   : > { %v592_v32 = vcombine.low %v584_v20, %v591_v24  ;;  %v624_v34 = vrot.slane %v596_v25, %v2712_v47  ;;  %v625_v35 = vcombine.low %v603_v26, %v610_v27  ;;  %v643_v37 = vcombine.low %v363_v0, %v367_v1 }
 0x10a   : > { %v644_v46 = vcombine.low %v371_v22, %v375_v23  ;;  %v645_v49 = vcombine.low %v379_v29, %v383_v30  ;;  %v652_v50 = vrot.slane %v642_v31, %v2712_v47  ;;  %v387_v51 = vrot.slane %v2726_v2, %v2688_v38  ;;  %v2755_v52 = vpop.xlane.xlu1 %1041 }
 0x10b   : > { %937 = vperm.xlu0 %2252, %v592_v32   ;;  %v626_v53 = vcombine.low %v617_v28, %v624_v34  ;;  %v633_v54 = vrot.slane %v625_v35, %v2712_v47  ;;  %v659_v48 = vrot.slane %v643_v37, %v2712_v47  ;;  %v391_v55 = vrot.slane %v2726_v2, %v2691_v39 }
 0x10c   : > { %v666_v56 = vrot.slane %v644_v46, %v2712_v47  ;;  %v673_v57 = vrot.slane %v645_v49, %v2712_v47  ;;  %v395_v58 = vrot.slane %v2726_v2, %v2694_v40  ;;  %v399_v59 = vrot.slane %v2726_v2, %v2697_v41 }
 0x10d   : > { %v640_v61 = vrot.slane %v626_v53, %v2712_v47  ;;  %v674_v62 = vcombine.low %v652_v50, %v659_v48  ;;  %v403_v63 = vrot.slane %v2726_v2, %v2700_v42  ;;  %v407_v0 = vrot.slane %v2726_v2, %v2703_v43 }
 0x10e   : > { %v675_v1 = vcombine.low %v666_v56, %v673_v57  ;;  %v411_v3 = vrot.slane %v2726_v2, %v2706_v44  ;;  %v415_v4 = vrot.slane %v2726_v2, %v2709_v45  ;;  %v691_v5 = vcombine.low %v387_v51, %v391_v55  ;;  %v1045_v14 = vpop.xlane.xlu1 %1044 }
 0x10f   : > { %v641_v6 = vcombine.low %v633_v54, %v640_v61  ;;  %v682_v7 = vrot.slane %v674_v62, %v2712_v47  ;;  %v692_v8 = vcombine.low %v395_v58, %v399_v59  ;;  %v693_v9 = vcombine.low %v403_v63, %v407_v0 }
 0x110   : > { %v689_v10 = vrot.slane %v675_v1, %v2712_v47  ;;  %v694_v11 = vcombine.low %v411_v3, %v415_v4  ;;  %v701_v12 = vrot.slane %v691_v5, %v2712_v47  ;;  %v1069_v13 = vrot.slane %v1036_v60, %v2688_v38 }
 0x111   : > { %940 = vperm.xlu1 %2253, %v641_v6   ;;  %v708_v15 = vrot.slane %v692_v8, %v2712_v47  ;;  %v715_v16 = vrot.slane %v693_v9, %v2712_v47  ;;  %v1073_v2 = vrot.slane %v1036_v60, %v2691_v39  ;;  %v1077_v17 = vrot.slane %v1036_v60, %v2694_v40 }
 0x112   : > { %v690_v18 = vcombine.low %v682_v7, %v689_v10  ;;  %v722_v20 = vrot.slane %v694_v11, %v2712_v47  ;;  %v1081_v21 = vrot.slane %v1036_v60, %v2697_v41  ;;  %v1085_v22 = vrot.slane %v1036_v60, %v2700_v42  ;;  %v1048_v8 = vpop.xlane.xlu1 %1047 }
 0x113   : > { %v723_v23 = vcombine.low %v701_v12, %v708_v15  ;;  %v1089_v24 = vrot.slane %v1036_v60, %v2703_v43  ;;  %v1093_v25 = vrot.slane %v1036_v60, %v2706_v44  ;;  %v1097_v26 = vrot.slane %v1036_v60, %v2709_v45 }
 0x114   : > { %v724_v27 = vcombine.low %v715_v16, %v722_v20  ;;  %v1322_v28 = vcombine.low %v1069_v13, %v1073_v2  ;;  %v1323_v29 = vcombine.low %v1077_v17, %v1081_v21  ;;  %v1165_v30 = vrot.slane %v1045_v14, %v2688_v38 }
 0x115   : > { %943 = vperm.xlu1 %2253, %v690_v18   ;;  %v731_v31 = vrot.slane %v723_v23, %v2712_v47  ;;  %v1324_v32 = vcombine.low %v1085_v22, %v1089_v24  ;;  %v1325_v34 = vcombine.low %v1093_v25, %v1097_v26  ;;  %v1169_v35 = vrot.slane %v1045_v14, %v2691_v39 }
 0x116   : > { %v738_v37 = vrot.slane %v724_v27, %v2712_v47  ;;  %v1332_v46 = vrot.slane %v1322_v28, %v2712_v47  ;;  %v1339_v49 = vrot.slane %v1323_v29, %v2712_v47  ;;  %v1173_v50 = vrot.slane %v1045_v14, %v2694_v40 }
 0x117   : > { %v1346_v51 = vrot.slane %v1324_v32, %v2712_v47  ;;  %v1353_v53 = vrot.slane %v1325_v34, %v2712_v47  ;;  %v1177_v54 = vrot.slane %v1045_v14, %v2697_v41  ;;  %v1181_v48 = vrot.slane %v1045_v14, %v2700_v42  ;;  %v270_v32 = vpop.xlane.xlu0 %269 }
 0x118   : > { %v739_v55 = vcombine.low %v731_v31, %v738_v37  ;;  %v1354_v56 = vcombine.low %v1332_v46, %v1339_v49  ;;  %v1185_v57 = vrot.slane %v1045_v14, %v2703_v43  ;;  %v1189_v58 = vrot.slane %v1045_v14, %v2706_v44 }
 0x119   : > { %v1355_v59 = vcombine.low %v1346_v51, %v1353_v53  ;;  %v1193_v60 = vrot.slane %v1045_v14, %v2709_v45  ;;  %v1469_v61 = vcombine.low %v1165_v30, %v1169_v35  ;;  %v1470_v62 = vcombine.low %v1173_v50, %v1177_v54 }
 0x11a   : > { %946 = vperm.xlu1 %2253, %v739_v55   ;;  %v1362_v63 = vrot.slane %v1354_v56, %v2712_v47  ;;  %v1471_v0 = vcombine.low %v1181_v48, %v1185_v57  ;;  %v1101_v1 = vrot.slane %v2740_v19, %v2688_v38  ;;  %v1105_v3 = vrot.slane %v2740_v19, %v2691_v39 }
 0x11b   : > { %v1369_v4 = vrot.slane %v1355_v59, %v2712_v47  ;;  %v1472_v5 = vcombine.low %v1189_v58, %v1193_v60  ;;  %v1479_v6 = vrot.slane %v1469_v61, %v2712_v47  ;;  %v1486_v7 = vrot.slane %v1470_v62, %v2712_v47 }
 0x11c   : > { %v1493_v9 = vrot.slane %v1471_v0, %v2712_v47  ;;  %v1109_v10 = vrot.slane %v2740_v19, %v2694_v40  ;;  %v1113_v11 = vrot.slane %v2740_v19, %v2697_v41  ;;  %v1117_v12 = vrot.slane %v2740_v19, %v2700_v42 }
 0x11d   : > { %v1370_v13 = vcombine.low %v1362_v63, %v1369_v4  ;;  %v1500_v14 = vrot.slane %v1472_v5, %v2712_v47  ;;  %v1501_v15 = vcombine.low %v1479_v6, %v1486_v7  ;;  %v1121_v16 = vrot.slane %v2740_v19, %v2703_v43 }
 0x11e   : > { %v1125_v2 = vrot.slane %v2740_v19, %v2706_v44  ;;  %v1129_v17 = vrot.slane %v2740_v19, %v2709_v45  ;;  %v1371_v18 = vcombine.low %v1101_v1, %v1105_v3  ;;  %v1372_v20 = vcombine.low %v1109_v10, %v1113_v11  ;;  %v1051_v1 = vpop.xlane.xlu1 %1050 }
 0x11f   : > { %1715 = vperm.xlu1 %2253, %v1370_v13   ;;  %v1502_v21 = vcombine.low %v1493_v9, %v1500_v14  ;;  %v1509_v22 = vrot.slane %v1501_v15, %v2712_v47  ;;  %v1373_v23 = vcombine.low %v1117_v12, %v1121_v16  ;;  %v1197_v24 = vrot.slane %v1048_v8, %v2688_v38 }
 0x120   : > { %v1374_v25 = vcombine.low %v1125_v2, %v1129_v17  ;;  %v1381_v26 = vrot.slane %v1371_v18, %v2712_v47  ;;  %v1388_v27 = vrot.slane %v1372_v20, %v2712_v47  ;;  %v1201_v28 = vrot.slane %v1048_v8, %v2691_v39 }
 0x121   : > { %v1516_v29 = vrot.slane %v1502_v21, %v2712_v47  ;;  %v1395_v19 = vrot.slane %v1373_v23, %v2712_v47  ;;  %v1205_v30 = vrot.slane %v1048_v8, %v2694_v40  ;;  %v1209_v31 = vrot.slane %v1048_v8, %v2697_v41 }
 0x122   : > { %v1402_v34 = vrot.slane %v1374_v25, %v2712_v47  ;;  %v1403_v35 = vcombine.low %v1381_v26, %v1388_v27  ;;  %v1213_v37 = vrot.slane %v1048_v8, %v2700_v42  ;;  %v1217_v46 = vrot.slane %v1048_v8, %v2703_v43 }
 0x123   : > { %v1517_v49 = vcombine.low %v1509_v22, %v1516_v29  ;;  %v1221_v50 = vrot.slane %v1048_v8, %v2706_v44  ;;  %v1225_v51 = vrot.slane %v1048_v8, %v2709_v45  ;;  %v1518_v53 = vcombine.low %v1197_v24, %v1201_v28 }
 0x124   : > { %v1404_v54 = vcombine.low %v1395_v19, %v1402_v34  ;;  %v1411_v48 = vrot.slane %v1403_v35, %v2712_v47  ;;  %v1519_v55 = vcombine.low %v1205_v30, %v1209_v31  ;;  %v1520_v56 = vcombine.low %v1213_v37, %v1217_v46 }
 0x125   : > { %1724 = vperm.xlu0 %2252, %v1517_v49   ;;  %v1521_v57 = vcombine.low %v1221_v50, %v1225_v51  ;;  %v1528_v58 = vrot.slane %v1518_v53, %v2712_v47  ;;  %v419_v59 = vrot.slane %v270_v32, %v2688_v38  ;;  %v423_v60 = vrot.slane %v270_v32, %v2691_v39 }
 0x126   : > { %v1418_v61 = vrot.slane %v1404_v54, %v2712_v47  ;;  %v1535_v62 = vrot.slane %v1519_v55, %v2712_v47  ;;  %v1542_v63 = vrot.slane %v1520_v56, %v2712_v47  ;;  %v427_v0 = vrot.slane %v270_v32, %v2694_v40 }
 0x127   : > { %v1549_v3 = vrot.slane %v1521_v57, %v2712_v47  ;;  %v431_v4 = vrot.slane %v270_v32, %v2697_v41  ;;  %v435_v5 = vrot.slane %v270_v32, %v2700_v42  ;;  %v439_v6 = vrot.slane %v270_v32, %v2703_v43 }
 0x128   : > { %v1419_v7 = vcombine.low %v1411_v48, %v1418_v61  ;;  %v1550_v8 = vcombine.low %v1528_v58, %v1535_v62  ;;  %v443_v9 = vrot.slane %v270_v32, %v2706_v44  ;;  %v447_v10 = vrot.slane %v270_v32, %v2709_v45  ;;  %v1057_v48 = vpop.xlane.xlu1 %1056 }
 0x129   : > { %v1551_v11 = vcombine.low %v1542_v63, %v1549_v3  ;;  %v740_v12 = vcombine.low %v419_v59, %v423_v60  ;;  %v741_v13 = vcombine.low %v427_v0, %v431_v4  ;;  %v742_v14 = vcombine.low %v435_v5, %v439_v6  ;;  %v273_v4 = vpop.xlane.xlu0 %272 }
 0x12a   : > { %1718 = vperm.xlu1 %2253, %v1419_v7   ;;  %v1558_v15 = vrot.slane %v1550_v8, %v2712_v47  ;;  %v743_v16 = vcombine.low %v443_v9, %v447_v10  ;;  %v1229_v2 = vrot.slane %v1051_v1, %v2688_v38  ;;  %v1233_v17 = vrot.slane %v1051_v1, %v2691_v39 }
 0x12b   : > { %v1565_v18 = vrot.slane %v1551_v11, %v2712_v47  ;;  %v750_v20 = vrot.slane %v740_v12, %v2712_v47  ;;  %v757_v21 = vrot.slane %v741_v13, %v2712_v47  ;;  %v764_v22 = vrot.slane %v742_v14, %v2712_v47 }
 0x12c   : > { %v771_v23 = vrot.slane %v743_v16, %v2712_v47  ;;  %v1237_v24 = vrot.slane %v1051_v1, %v2694_v40  ;;  %v1241_v25 = vrot.slane %v1051_v1, %v2697_v41  ;;  %v1245_v26 = vrot.slane %v1051_v1, %v2700_v42 }
 0x12d   : > { %v1566_v27 = vcombine.low %v1558_v15, %v1565_v18  ;;  %v772_v28 = vcombine.low %v750_v20, %v757_v21  ;;  %v1249_v29 = vrot.slane %v1051_v1, %v2703_v43  ;;  %v1253_v19 = vrot.slane %v1051_v1, %v2706_v44 }
 0x12e   : > { %v773_v30 = vcombine.low %v764_v22, %v771_v23  ;;  %v1257_v31 = vrot.slane %v1051_v1, %v2709_v45  ;;  %v1567_v32 = vcombine.low %v1229_v2, %v1233_v17  ;;  %v1568_v34 = vcombine.low %v1237_v24, %v1241_v25 }
 0x12f   : > { %1727 = vperm.xlu0 %2252, %v1566_v27   ;;  %v780_v35 = vrot.slane %v772_v28, %v2712_v47  ;;  %v1569_v37 = vcombine.low %v1245_v26, %v1249_v29  ;;  %v1133_v46 = vrot.slane %v2755_v52, %v2688_v38  ;;  %v1137_v49 = vrot.slane %v2755_v52, %v2691_v39  ;;  %v276_v28 = vpop.xlane.xlu0 %275 }
 0x130   : > { %v787_v50 = vrot.slane %v773_v30, %v2712_v47  ;;  %v1570_v51 = vcombine.low %v1253_v19, %v1257_v31  ;;  %v1577_v53 = vrot.slane %v1567_v32, %v2712_v47  ;;  %v1584_v54 = vrot.slane %v1568_v34, %v2712_v47 }
 0x131   : > { %v1591_v55 = vrot.slane %v1569_v37, %v2712_v47  ;;  %v1141_v56 = vrot.slane %v2755_v52, %v2694_v40  ;;  %v1145_v57 = vrot.slane %v2755_v52, %v2697_v41  ;;  %v1149_v58 = vrot.slane %v2755_v52, %v2700_v42 }
 0x132   : > { %v788_v59 = vcombine.low %v780_v35, %v787_v50  ;;  %v1598_v60 = vrot.slane %v1570_v51, %v2712_v47  ;;  %v1599_v61 = vcombine.low %v1577_v53, %v1584_v54  ;;  %v1153_v62 = vrot.slane %v2755_v52, %v2703_v43 }
 0x133   : > { %v1157_v63 = vrot.slane %v2755_v52, %v2706_v44  ;;  %v1161_v0 = vrot.slane %v2755_v52, %v2709_v45  ;;  %v1420_v1 = vcombine.low %v1133_v46, %v1137_v49  ;;  %v1421_v3 = vcombine.low %v1141_v56, %v1145_v57 }
 0x134   : > { %949 = vperm.xlu1 %2253, %v788_v59   ;;  %v1600_v5 = vcombine.low %v1591_v55, %v1598_v60  ;;  %v1607_v6 = vrot.slane %v1599_v61, %v2712_v47  ;;  %v1422_v7 = vcombine.low %v1149_v58, %v1153_v62  ;;  %v1293_v8 = vrot.slane %v1057_v48, %v2688_v38 }
 0x135   : > { %v1423_v9 = vcombine.low %v1157_v63, %v1161_v0  ;;  %v1430_v10 = vrot.slane %v1420_v1, %v2712_v47  ;;  %v1437_v11 = vrot.slane %v1421_v3, %v2712_v47  ;;  %v1297_v12 = vrot.slane %v1057_v48, %v2691_v39  ;;  %v279_v0 = vpop.xlane.xlu0 %278 }
 0x136   : > { %v1614_v13 = vrot.slane %v1600_v5, %v2712_v47  ;;  %v1444_v52 = vrot.slane %v1422_v7, %v2712_v47  ;;  %v1301_v14 = vrot.slane %v1057_v48, %v2694_v40  ;;  %v1305_v15 = vrot.slane %v1057_v48, %v2697_v41 }
 0x137   : > { %v1451_v16 = vrot.slane %v1423_v9, %v2712_v47  ;;  %v1452_v2 = vcombine.low %v1430_v10, %v1437_v11  ;;  %v1309_v17 = vrot.slane %v1057_v48, %v2700_v42  ;;  %v1313_v18 = vrot.slane %v1057_v48, %v2703_v43 }
 0x138   : > { %v1615_v20 = vcombine.low %v1607_v6, %v1614_v13  ;;  %v1317_v21 = vrot.slane %v1057_v48, %v2706_v44  ;;  %v1321_v22 = vrot.slane %v1057_v48, %v2709_v45  ;;  %v1665_v23 = vcombine.low %v1293_v8, %v1297_v12 }
 0x139   : > { %v1453_v24 = vcombine.low %v1444_v52, %v1451_v16  ;;  %v1460_v25 = vrot.slane %v1452_v2, %v2712_v47  ;;  %v1666_v26 = vcombine.low %v1301_v14, %v1305_v15  ;;  %v1667_v27 = vcombine.low %v1309_v17, %v1313_v18 }
 0x13a   : > { %1730 = vperm.xlu0 %2252, %v1615_v20   ;;  %v1668_v29 = vcombine.low %v1317_v21, %v1321_v22  ;;  %v1675_v19 = vrot.slane %v1665_v23, %v2712_v47  ;;  %v451_v30 = vrot.slane %v273_v4, %v2688_v38  ;;  %v455_v31 = vrot.slane %v273_v4, %v2691_v39 }
 0x13b   : > { %v1467_v32 = vrot.slane %v1453_v24, %v2712_v47  ;;  %v1682_v34 = vrot.slane %v1666_v26, %v2712_v47  ;;  %v1689_v35 = vrot.slane %v1667_v27, %v2712_v47  ;;  %v459_v37 = vrot.slane %v273_v4, %v2694_v40 }
 0x13c   : > { %v1696_v46 = vrot.slane %v1668_v29, %v2712_v47  ;;  %v463_v49 = vrot.slane %v273_v4, %v2697_v41  ;;  %v467_v50 = vrot.slane %v273_v4, %v2700_v42  ;;  %v471_v51 = vrot.slane %v273_v4, %v2703_v43 }
 0x13d   : > { %v1468_v53 = vcombine.low %v1460_v25, %v1467_v32  ;;  %v1697_v54 = vcombine.low %v1675_v19, %v1682_v34  ;;  %v475_v48 = vrot.slane %v273_v4, %v2706_v44  ;;  %v479_v55 = vrot.slane %v273_v4, %v2709_v45  ;;  %v1054_v25 = vpop.xlane.xlu0 %1053 }
 0x13e   : > { %v1698_v56 = vcombine.low %v1689_v35, %v1696_v46  ;;  %v789_v57 = vcombine.low %v451_v30, %v455_v31  ;;  %v790_v58 = vcombine.low %v459_v37, %v463_v49  ;;  %v791_v59 = vcombine.low %v467_v50, %v471_v51 }
 0x13f   : > { %1721 = vperm.xlu1 %2253, %v1468_v53   ;;  %v1705_v60 = vrot.slane %v1697_v54, %v2712_v47  ;;  %v792_v61 = vcombine.low %v475_v48, %v479_v55  ;;  %v483_v62 = vrot.slane %v276_v28, %v2688_v38  ;;  %v487_v63 = vrot.slane %v276_v28, %v2691_v39 }
 0x140   : > { %v1712_v1 = vrot.slane %v1698_v56, %v2712_v47  ;;  %v799_v3 = vrot.slane %v789_v57, %v2712_v47  ;;  %v806_v5 = vrot.slane %v790_v58, %v2712_v47  ;;  %v813_v4 = vrot.slane %v791_v59, %v2712_v47 }
 0x141   : > { %v820_v6 = vrot.slane %v792_v61, %v2712_v47  ;;  %v491_v7 = vrot.slane %v276_v28, %v2694_v40  ;;  %v495_v8 = vrot.slane %v276_v28, %v2697_v41  ;;  %v499_v9 = vrot.slane %v276_v28, %v2700_v42 }
 0x142   : > { %v1713_v10 = vcombine.low %v1705_v60, %v1712_v1  ;;  %v821_v11 = vcombine.low %v799_v3, %v806_v5  ;;  %v503_v12 = vrot.slane %v276_v28, %v2703_v43  ;;  %v507_v13 = vrot.slane %v276_v28, %v2706_v44 }
 0x143   : > { %v822_v52 = vcombine.low %v813_v4, %v820_v6  ;;  %v511_v14 = vrot.slane %v276_v28, %v2709_v45  ;;  %v838_v15 = vcombine.low %v483_v62, %v487_v63  ;;  %v839_v16 = vcombine.low %v491_v7, %v495_v8 }
 0x144   : > { %1736 = vperm.xlu0 %2252, %v1713_v10   ;;  %v829_v2 = vrot.slane %v821_v11, %v2712_v47  ;;  %v840_v17 = vcombine.low %v499_v9, %v503_v12  ;;  %v515_v18 = vrot.slane %v279_v0, %v2688_v38  ;;  %v519_v20 = vrot.slane %v279_v0, %v2691_v39 }
 0x145   : > { %v836_v21 = vrot.slane %v822_v52, %v2712_v47  ;;  %v841_v22 = vcombine.low %v507_v13, %v511_v14  ;;  %v848_v23 = vrot.slane %v838_v15, %v2712_v47  ;;  %v855_v24 = vrot.slane %v839_v16, %v2712_v47  ;;  %v1808_v15 = vld [vmem:[#allocation7] sm:$0xff]  ;;  %v1809_v16 = vld [vmem:[#allocation7 + $0x8] sm:$0xff] }
 0x146   : > { %v862_v26 = vrot.slane %v840_v17, %v2712_v47  ;;  %v523_v27 = vrot.slane %v279_v0, %v2694_v40  ;;  %v527_v28 = vrot.slane %v279_v0, %v2697_v41  ;;  %v531_v29 = vrot.slane %v279_v0, %v2700_v42 }
 0x147   : > { %v837_v19 = vcombine.low %v829_v2, %v836_v21  ;;  %v869_v30 = vrot.slane %v841_v22, %v2712_v47  ;;  %v870_v31 = vcombine.low %v848_v23, %v855_v24  ;;  %v535_v32 = vrot.slane %v279_v0, %v2703_v43  ;;  %v1812_v22 = vld [vmem:[#allocation7 + $0x20] sm:$0xff]  ;;  %v1813_v23 = vld [vmem:[#allocation7 + $0x28] sm:$0xff] }
 0x148   : > { %v539_v34 = vrot.slane %v279_v0, %v2706_v44  ;;  %v543_v35 = vrot.slane %v279_v0, %v2709_v45  ;;  %v887_v37 = vcombine.low %v515_v18, %v519_v20  ;;  %v888_v46 = vcombine.low %v523_v27, %v527_v28  ;;  %v1810_v18 = vld [vmem:[#allocation7 + $0x10] sm:$0xff]  ;;  %v1811_v20 = vld [vmem:[#allocation7 + $0x18] sm:$0xff] }
 0x149   : > { %952 = vperm.xlu1 %2253, %v837_v19   ;;  %v871_v49 = vcombine.low %v862_v26, %v869_v30  ;;  %v878_v50 = vrot.slane %v870_v31, %v2712_v47  ;;  %v889_v51 = vcombine.low %v531_v29, %v535_v32  ;;  %v1261_v53 = vrot.slane %v1054_v25, %v2688_v38  ;;  %v1815_v26 = vld [vmem:[#allocation7 + $0x38] sm:$0xff] }
 0x14a   : > { %v890_v54 = vcombine.low %v539_v34, %v543_v35  ;;  %v897_v48 = vrot.slane %v887_v37, %v2712_v47  ;;  %v904_v55 = vrot.slane %v888_v46, %v2712_v47  ;;  %v1265_v56 = vrot.slane %v1054_v25, %v2691_v39 }
 0x14b   : > { %v885_v57 = vrot.slane %v871_v49, %v2712_v47  ;;  %v911_v58 = vrot.slane %v889_v51, %v2712_v47  ;;  %v1269_v59 = vrot.slane %v1054_v25, %v2694_v40  ;;  %v1273_v60 = vrot.slane %v1054_v25, %v2697_v41 }
 0x14c   : > { %v918_v61 = vrot.slane %v890_v54, %v2712_v47  ;;  %v919_v62 = vcombine.low %v897_v48, %v904_v55  ;;  %v1277_v38 = vrot.slane %v1054_v25, %v2700_v42  ;;  %v1281_v63 = vrot.slane %v1054_v25, %v2703_v43 }
 0x14d   : > { %v886_v0 = vcombine.low %v878_v50, %v885_v57  ;;  %v1285_v1 = vrot.slane %v1054_v25, %v2706_v44  ;;  %v1289_v39 = vrot.slane %v1054_v25, %v2709_v45  ;;  %v1616_v3 = vcombine.low %v1261_v53, %v1265_v56  ;;  %v1814_v25 = vld [vmem:[#allocation7 + $0x30] sm:$0xff] }
 0x14e   : > { %v920_v5 = vcombine.low %v911_v58, %v918_v61  ;;  %v927_v4 = vrot.slane %v919_v62, %v2712_v47  ;;  %v1617_v6 = vcombine.low %v1269_v59, %v1273_v60  ;;  %v1618_v40 = vcombine.low %v1277_v38, %v1281_v63 }
 0x14f   : > { %955 = vperm.xlu1 %2253, %v886_v0   ;;  %v1619_v41 = vcombine.low %v1285_v1, %v1289_v39  ;;  %v1626_v7 = vrot.slane %v1616_v3, %v2712_v47  ;;  %v2441_v52 = vmov 0.0   ;;  %v2442_v14 = vmov -inf  }
 0x150   : > { %v934_v8 = vrot.slane %v920_v5, %v2712_v47  ;;  %v1633_v42 = vrot.slane %v1617_v6, %v2712_v47  ;;  %v1640_v43 = vrot.slane %v1618_v40, %v2712_v47  ;;  %237 = vst.msk [vmem:[#allocation2] sm:$0x1] %vm236_vm0, %v2441_v52  ;;  %2142 = vmatprep.subr.mxu1 %v2441_v52  ;;  %238 = vst.msk [vmem:[#allocation3] sm:$0x1] %vm236_vm0, %v2442_v14  ;;  %v2443_v17 = vmov 0.0|0.0  }
 0x151   : > { %v1647_v44 = vrot.slane %v1619_v41, %v2712_v47  ;;  %v2148_v2 = vpack.c.bf16 %v1809_v16, %v1808_v15  ;;  %2147 = vmatprep.subr.bf16.mxu0 %v2443_v17  ;;  %v2151_v21 = vpack.c.bf16 %v1811_v20, %v1810_v18  ;;  %v2154_v24 = vpack.c.bf16 %v1813_v23, %v1812_v22 }
 0x152   : > { %v935_v9 = vcombine.low %v927_v4, %v934_v8  ;;  %v1648_v45 = vcombine.low %v1626_v7, %v1633_v42  ;;  %2139 = vmatprep.mubr.msk.f32.mxu0 %vm2444_vm1, %v2441_v52  ;;  %2144 = vmatprep.mubr.msk.f32.mxu1 %vm2444_vm1, %v2441_v52  ;;  %v2157_v27 = vpack.c.bf16 %v1815_v26, %v1814_v25  ;;  %v961_v35 = vand.u32 127, %v288_v33 }
 0x153   : > { %v1649_v10 = vcombine.low %v1640_v43, %v1647_v44  ;;  %2149 = vmatpush3.bf16.msra.mxu0 %v2148_v2 }
 0x154   : > { %958 = vperm.xlu1 %2253, %v935_v9   ;;  %v1656_v11 = vrot.slane %v1648_v45, %v2712_v47  ;;  %2150 = vmatprep.subr.bf16.mxu0 %v2443_v17  ;;  %v966_v46 = vadd.s32 4294967288, %v961_v35  ;;  %v973_v49 = vadd.s32 4294967280, %v961_v35  ;;  %v980_v51 = vadd.s32 4294967272, %v961_v35 }
 0x155   : > { %v1663_v12 = vrot.slane %v1649_v10, %v2712_v47  ;;  %v987_v53 = vadd.s32 4294967264, %v961_v35  ;;  %v1001_v56 = vadd.s32 4294967248, %v961_v35  ;;  %v964_v57 = vsub.s32 %v961_v35, %v2685_v36 }
 0x156   : > { %v969_v54 = vsub.s32 %v966_v46, %v2685_v36  ;;  %v976_v55 = vsub.s32 %v973_v49, %v2685_v36  ;;  %v983_v58 = vsub.s32 %v980_v51, %v2685_v36  ;;  %v994_v59 = vadd.s32 4294967256, %v961_v35 }
 0x157   : > { %v1664_v13 = vcombine.low %v1656_v11, %v1663_v12  ;;  %2152 = vmatpush3.bf16.msra.mxu0 %v2151_v21  ;;  %v990_v60 = vsub.s32 %v987_v53, %v2685_v36  ;;  %v1008_v0 = vadd.s32 4294967240, %v961_v35  ;;  %v1004_v1 = vsub.s32 %v1001_v56, %v2685_v36  ;;  %v255_v23 = vld [vmem:[#allocation2] sm:$0x1] }
 0x158   : > { %2153 = vmatprep.subr.bf16.mxu0 %v2443_v17  ;;  %v997_v4 = vsub.s32 %v994_v59, %v2685_v36 }
 0x159   : > { %1733 = vperm.xlu1 %2253, %v1664_v13   ;;  %v1011_v11 = vsub.s32 %v1008_v0, %v2685_v36 }
 0x15b   : > { %2155 = vmatpush3.bf16.msra.mxu0 %v2154_v24 }
 0x15c   : > { %2156 = vmatprep.subr.bf16.mxu0 %v2443_v17 }
 0x15f   : > { %2158 = vmatpush3.bf16.msra.mxu0 %v2157_v27 }
 0x18a   : > { %v938_v34 = vpop.permute.xlu0 %937 }
 0x18b   : > { %v965_v39 = vrot.slane %v938_v34, %v964_v57 }
 0x190   : > { %v941_v28 = vpop.permute.xlu1 %940 }
 0x191   : > { %v970_v61 = vrot.slane %v941_v28, %v969_v54 }
 0x193   : > { %v972_v41 = vsel %vm971_vm2, %v970_v61, %v965_v39 }
 0x194   : > { %v944_v29 = vpop.permute.xlu1 %943 }
 0x195   : > { %v977_v38 = vrot.slane %v944_v29, %v976_v55 }
 0x197   : > { %v979_v43 = vsel %vm978_vm3, %v977_v38, %v972_v41 }
 0x199   : > { %v947_v19 = vpop.permute.xlu1 %946 }
 0x19a   : > { %v984_v3 = vrot.slane %v947_v19, %v983_v58 }
 0x19c   : > { %v986_v10 = vsel %vm985_vm4, %v984_v3, %v979_v43 }
 0x19e   : > { %v1716_v30 = vpop.permute.xlu1 %1715 }
 0x19f   : > { %v1741_v5 = vrot.slane %v1716_v30, %v964_v57 }
 0x1a4   : > { %v1725_v50 = vpop.permute.xlu0 %1724 }
 0x1a5   : > { %v1755_v7 = vrot.slane %v1725_v50, %v983_v58  ;;  %v1895_v50 = vld [vmem:[#allocation9] sm:$0xf] }
 0x1a6   : > { %2143 = vmatpush3.msk.msra.mxu1 %vm1900_vm11, %v1895_v50 }
 0x1a9   : > { %v1719_v31 = vpop.permute.xlu1 %1718 }
 0x1aa   : > { %v1745_v62 = vrot.slane %v1719_v31, %v969_v54  ;;  %v1033_v31 = vld [vmem:[#allocation3] sm:$0x1] }
 0x1ac   : > { %v1746_v8 = vsel %vm971_vm2, %v1745_v62, %v1741_v5 }
 0x1ae   : > { %v1728_v33 = vpop.permute.xlu0 %1727 }
 0x1af   : > { %v1760_v12 = vrot.slane %v1728_v33, %v990_v60 }
 0x1b3   : > { %v950_v32 = vpop.permute.xlu1 %949 }
 0x1b4   : > { %v991_v40 = vrot.slane %v950_v32, %v990_v60 }
 0x1b6   : > { %v993_v13 = vsel %vm992_vm5, %v991_v40, %v986_v10 }
 0x1b9   : > { %v1731_v44 = vpop.permute.xlu0 %1730 }
 0x1ba   : > { %v1765_v21 = vrot.slane %v1731_v44, %v997_v4 }
 0x1be   : > { %v1722_v37 = vpop.permute.xlu1 %1721 }
 0x1bf   : > { %v1750_v63 = vrot.slane %v1722_v37, %v976_v55 }
 0x1c1   : > { %v1751_v9 = vsel %vm978_vm3, %v1750_v63, %v1746_v8 }
 0x1c2   : > { %v1756_v14 = vsel %vm985_vm4, %v1755_v7, %v1751_v9 }
 0x1c3   : > { %v1737_v18 = vpop.permute.xlu0 %1736  ;;  %v1761_v36 = vsel %vm992_vm5, %v1760_v12, %v1756_v14 }
 0x1c4   : > { %v1775_v26 = vrot.slane %v1737_v18, %v1011_v11  ;;  %v1766_v27 = vsel %vm999_vm6, %v1765_v21, %v1761_v36 }
 0x1c8   : > { %v953_v48 = vpop.permute.xlu1 %952 }
 0x1c9   : > { %v998_v42 = vrot.slane %v953_v48, %v997_v4 }
 0x1cb   : > { %v1000_v15 = vsel %vm999_vm6, %v998_v42, %v993_v13 }
 0x1ce   : > { %v956_v6 = vpop.permute.xlu1 %955 }
 0x1cf   : > { %v1005_v45 = vrot.slane %v956_v6, %v1004_v1 }
 0x1d1   : > { %v1007_v2 = vsel %vm1006_vm7, %v1005_v45, %v1000_v15 }
 0x1d3   : > { %v959_v52 = vpop.permute.xlu1 %958 }
 0x1d4   : > { %v1012_v16 = vrot.slane %v959_v52, %v1011_v11 }
 0x1d6   : > { %v1014_v17 = vsel %vm1013_vm8, %v1012_v16, %v1007_v2 }
 0x1d7   : > { %v1021_v20 = vrot.slane %v1014_v17, %v2712_v47 }
 0x1d8   : > { %v1734_v22 = vpop.permute.xlu1 %1733 }
 0x1d9   : > { %v1028_v24 = vrot.slane %v1021_v20, %v2712_v47  ;;  %v1770_v25 = vrot.slane %v1734_v22, %v1004_v1 }
 0x1db   : > { %v1771_v28 = vsel %vm1006_vm7, %v1770_v25, %v1766_v27  ;;  %v1030_v29 = vadd.f32 %v1028_v24, %v255_v23 }
 0x1dc   : > { %v1776_v19 = vsel %vm1013_vm8, %v1775_v26, %v1771_v28 }
 0x1dd   : > { %v1783_v30 = vrot.slane %v1776_v19, %v2712_v47  ;;  %1032 = vst.msk [vmem:[#allocation2] sm:$0x1] %vm236_vm0, %v1030_v29 }
 0x1df   : > { %v1790_v32 = vrot.slane %v1783_v30, %v2712_v47 }
 0x1e1   : > { %v1792_v34 = vmax.f32 %v1033_v31, %v1790_v32 }
 0x1e3   : > { %1793 = vst.msk [vmem:[#allocation3] sm:$0x1] %vm236_vm0, %v1792_v34 }
 0x1e4   : > { %v1797_v35 = vld [vmem:[#allocation2] sm:$0x1] }
 0x1e5   : > { %v1798_v37 = vmul.f32 0.00390625, %v1797_v35 }
 0x1ea   : > { %v2103_v46 = vld [vmem:[#allocation3] ss:$0 sm:$0xff] }
 0x1eb   : > { %v1807_v49 = vsel %vm1806_vm9, %v1798_v37, %v2103_v46 }
 0x1ec   : > { %2140 = vmatmul.mubr.msk.f32.vlgmr.msra.gmra.mrb[0].mxu0 %vm1816_vm10, %v1807_v49 }
 0x2bf   : > { %v1886_v51 = vpop.f32.mrb[0].mxu0 }
 0x2c0   : > { %v1890_v53 = vmax.f32 %v1886_v51, 0.0  ;;  %v2141_v54 = vpop.f32.mrb[1].mxu0 }
 0x2c2   : > { %v1892_v48 = vrot.slane %v1890_v53, 1 }
 0x2c4   : > { %v1894_v47 = vadd.f32 %v1892_v48, %v1890_v53 }
 0x2c6   : > { %2145 = vmatmul.mubr.msk.f32.vlgmr.msra.gmra.mrb[0].mxu1 %vm1896_vm12, %v1894_v47 }
 0x399   : > { %v1970_v55 = vpop.f32.mrb[0].mxu1 }
 0x39a   : > { %v2107_v56 = vmul.f32 -1.442695, %v1970_v55  ;;  %v2146_v57 = vpop.f32.mrb[1].mxu1 }
 0x39c   : > { %2254 = vpow2.f32 %v2107_v56 }
 0x3a6   : > { %v2255_v58 = vpop.eup %2254 }
 0x3a7   : > { %v1977_v59 = vadd.f32 1.0, %v2255_v58 }
 0x3a9   : > { %2256 = vrcp.f32 %v1977_v59 }
 0x3b3   : > { %v2257_v60 = vpop.eup %2256 }
 0x3b4   : > { %1980 = vst.msk [vmem:[%s230_s22] sm:$0x1] %vm236_vm0, %v2257_v60 }
 0x3b5   : > { %2357 = shalt.err (!%p2354_p11)
}
 0x3b6   : > { %s2358_s21 = scalar_lea.hbm %s3004_s8, 16  ;;  %s2362_s18 = scalar_lea.hbm %s3057_s3, 32 }
 0x3b7   : > { %p2359_p0 = scmp.ne.s32.totalorder %s3004_s8, %s2358_s21  ;;  %p2363_p6 = scmp.lt.u32.totalorder %s3004_s8, %s3057_s3 }
 0x3b8   : > { %p2364_p7 = scmp.lt.u32.totalorder %s2362_s18, %s2358_s21  ;;  %p2366_p8 = scmp.lt.u32.totalorder %s2358_s21, %s3004_s8 }
 0x3b9   : > { %p2360_p4 = pnand %p2359_p0, %p3072_p12 }
 0x3ba   : > { %p2365_p2 = por %p2364_p7, %p2363_p6 }
 0x3bb   : > { %p2361_p13 = pneg %p2360_p4 }
 0x3bc   : > { %p2367_p1 = por %p2366_p8, %p2365_p2 }
 0x3be   : > { %p2368_p10 = pnand %p2367_p1, %p2361_p13 }
 0x3c0   : > { %2371 = shalt.err (!%p2368_p10)
}
 0x3c1   : > { %2169 = dma.vmem_to_hbm [thread:$0]  (%p3072_p12), %s3006_s24, 16, %s3004_s8, %s1982_s26  }
 0x3c2 PF: > { %s2006_s28 = sand.u32 1, %s2410_s12   ;;  %p3073_p3 = scmp.ne.s32.totalorder %s3065_s23, 0 }
 0x3c3   : > { %p3074_p5 = scmp.ge.s32.totalorder %s2430_s17, 2  ;;  %s2007_s20 = scalar_lea.sflag [#allocation6], %s2006_s28 }
 0x3c5   : > { %p2183_p9 = pnand %p3074_p5, %p3073_p3 }
 0x3c7   : > { %2405 = dma.done.wait (!%p2183_p9), %s2007_s20, 16  }
 0x3c8   : > { %2407 = vsyncadd (!%p2183_p9), %s2007_s20, 4294967280  ;;  %s20_s17 = sadd.s32 1, %s2430_s17   ;;  %s3075_s12 = smov %s2414_s13 }
 0x3c9   : > { %p17_p11 = scmp.ge.s32.totalorder %s20_s17, 4   ;;  %s3076_s13 = smov %s2418_s14 }
 0x3ca   : > { %s3077_s14 = smov %s2608_s30  ;;  %s3078_s15 = smov %s2426_s16 }
 0x3cb   : > { %s3079_s16 = smov %s3081_s11  ;;  %19 = sbr.rel (!%p17_p11) target bundleno = 7 (0x7), region = 93 }
 0x3d2   :  { %2011 = vsyncpa [#allocation5], 1 }
 0x3d3   :  { %2013 = vsyncpa [#allocation5 + $0x1], 1 }
 0x3d4   :  { %2014 = vsyncpa [#allocation8], 1 }
 0x3d5   :  { %2015 = vsyncpa [#allocation6], 1 }
 0x3d6   :  { %2017 = vsyncpa [#allocation6 + $0x1], 1 }

</bundles_post_ra>
